<compile_context>
chip_gen: v7x
topology: tpu7x:2x2x1
jax: 0.10.0
libtpu: 0.0.40
codegen_flags: <defaults>
</compile_context>

<pallas_src>
import functools

import jax
import jax.numpy as jnp
from jax.experimental import pallas as pl
from jax.experimental.pallas import tpu as pltpu


_LANE = 128     # last-dim multiple for dense (unmasked) vector stores
_SUBLANE = 8    # second-to-last-dim multiple


def _round_up(n, m):
    return ((n + m - 1) // m) * m


def _pad_axis(a, axis, target):
    pad = target - a.shape[axis]
    if pad == 0:
        return a
    widths = [(0, 0)] * a.ndim
    widths[axis] = (0, pad)
    return jnp.pad(a, widths)


# ---------------------------------------------------------------------------
# In-kernel math
# ---------------------------------------------------------------------------

def _masked_softmax_lastdim(s, mask):
    """allennlp masked_softmax (memory_efficient=False), dim=-1, fused form.

    s:    (TB, L1, L2) f32 scores
    mask: (TB, 1,  L2) f32 mask (broadcasts over L1)

    Reference:  p = softmax(s*mask); p = p*mask; p = p/(sum(p)+1e-13)
    Fused (identical): alpha = e*mask / sum(e*(mask+1e-13)),
                       e = exp(s*mask - rowmax(s*mask))
    One XLU row reduction; EUP approx reciprocal + one Newton step.
    """
    masked = s * mask
    mx = jnp.max(masked, axis=-1, keepdims=True)
    e = jnp.exp(masked - mx)
    num = e * mask
    denom = jnp.sum(e * (mask + 1e-13), axis=-1, keepdims=True)
    r = pl.reciprocal(denom, approx=True)
    r = r * (2.0 - denom * r)          # one Newton step -> ~f32 accuracy
    return num * r


def _scores_batched(x, y):
    """(TB, L1, H) x (TB, L2, H) -> (TB, L1, L2), transpose-free batched dot."""
    return jax.lax.dot_general(
        x, y,
        dimension_numbers=(((2,), (2,)), ((0,), (0,))),
        preferred_element_type=jnp.float32)


def _make_identity_kernel(write_scores):
    def kernel(x_ref, y_ref, m_ref, *out_refs):
        x = x_ref[...]                                   # (TB, L1, H)
        y = y_ref[...]                                   # (TB, L2, H)
        m = m_ref[...].astype(jnp.float32)               # (TB, 1,  L2)
        s = _scores_batched(x, y)                        # (TB, L1, L2) on MXU
        alpha = _masked_softmax_lastdim(s, m)
        if write_scores:
            scores_ref, alpha_ref = out_refs
            scores_ref[...] = s.astype(scores_ref.dtype)
        else:
            (alpha_ref,) = out_refs
        alpha_ref[...] = alpha.astype(alpha_ref.dtype)
    return kernel


def _make_proj_kernel(write_scores):
    def kernel(x_ref, y_ref, m_ref, w_ref, b_ref, *out_refs):
        x = x_ref[...]                                   # (TB, L1, H)
        y = y_ref[...]                                   # (TB, L2, H)
        m = m_ref[...].astype(jnp.float32)               # (TB, 1,  L2)
        w = w_ref[...]                                   # (H, P)
        b = b_ref[...]                                   # (1, P)
        TB, L1, H = x.shape
        L2 = y.shape[1]
        P = w.shape[1]
        # Two separate MXU dots; no concatenate / post-matmul slice copies.
        x_proj = jnp.maximum(
            jnp.dot(x.reshape(TB * L1, H), w,
                    preferred_element_type=jnp.float32) + b, 0.0
        ).reshape(TB, L1, P)
        y_proj = jnp.maximum(
            jnp.dot(y.reshape(TB * L2, H), w,
                    preferred_element_type=jnp.float32) + b, 0.0
        ).reshape(TB, L2, P)
        s = _scores_batched(x_proj, y_proj)              # (TB, L1, L2)
        alpha = _masked_softmax_lastdim(s, m)
        if write_scores:
            scores_ref, alpha_ref = out_refs
            scores_ref[...] = s.astype(scores_ref.dtype)
        else:
            (alpha_ref,) = out_refs
        alpha_ref[...] = alpha.astype(alpha_ref.dtype)
    return kernel


# ---------------------------------------------------------------------------
# Tiling / VMEM accounting
# ---------------------------------------------------------------------------

def _tpu_vmem_capacity():
    try:
        return int(pltpu.get_tpu_info().vmem_capacity_bytes)
    except Exception:
        return 64 << 20            # conservative (v7x-class) fallback


def _block_footprint(tb, L1p, L2p, H, P, n_out, identity):
    """VMEM bytes for one grid step: double-buffered blocks + in-kernel temps."""
    f32 = 4
    in_elems = tb * L1p * H + tb * L2p * H + tb * 1 * L2p
    out_elems = n_out * tb * L1p * L2p
    w_elems = 0 if identity else (H * P + P)
    dbl = 2 * (in_elems + out_elems + w_elems)           # double buffering
    tmp = 4 * tb * L1p * L2p                             # s / e / num / alpha
    if not identity:
        tmp += tb * (L1p + L2p) * P                      # x_proj, y_proj
    return f32 * (dbl + tmp)


def _pick_tb(B, budget, prefer_even_grid, fp):
    """Largest batch-block that fits the budget; even grid length on dual-TC."""
    tb = 1
    while tb < B and fp(tb + 1) <= budget:
        tb += 1
    if prefer_even_grid and B > 1:
        g = pl.cdiv(B, tb)
        if g % 2 == 1:
            tb = max(1, pl.cdiv(B, g + 1))
    return tb


# ---------------------------------------------------------------------------
# Public wrapper
# ---------------------------------------------------------------------------

@functools.partial(jax.jit, static_argnames=("identity", "return_scores"))
def seq_attn_mat(x, y, y_mask, proj_w=None, proj_b=None, *,
                 identity=True, return_scores=True):
    """Pallas SeqAttnMat forward.

    x:      (B, L1, H) float32
    y:      (B, L2, H) float32
    y_mask: (B, L2)    float32 (1.0 keep / 0.0 masked)
    Returns (scores, alpha) [both (B, L1, L2) f32], or alpha only if
    return_scores=False.
    """
    B, L1, H = x.shape
    _, L2, _ = y.shape
    P = H if identity else proj_w.shape[1]

    # --- pad for lane/sublane density (results sliced back afterwards) ------
    L1p = _round_up(L1, _SUBLANE)
    L2p = _round_up(L2, _LANE)
    x_p = _pad_axis(x, 1, L1p)
    y_p = _pad_axis(y, 1, L2p)
    m_p = _pad_axis(y_mask.astype(jnp.float32), 1, L2p)[:, None, :]  # (B,1,L2p)

    n_out = 2 if return_scores else 1
    vmem_cap = _tpu_vmem_capacity()
    small_vmem = vmem_cap <= (64 << 20)      # v7x-class: 64 MiB / TC, 2 TCs
    budget = (24 << 20) if small_vmem else (64 << 20)
    fp = lambda tb: _block_footprint(tb, L1p, L2p, H, P, n_out, identity)

    TB = _pick_tb(B, budget, small_vmem, fp)
    grid_len = pl.cdiv(B, TB)
    if small_vmem and B > 1 and grid_len > 1 and grid_len % 2 == 1:
        grid_len += 1                         # keep both TensorCores fed
    Bp = grid_len * TB

    x_p = _pad_axis(x_p, 0, Bp)
    y_p = _pad_axis(y_p, 0, Bp)
    m_p = _pad_axis(m_p, 0, Bp)               # padded batches fully masked

    vmem_limit = int(min(int(0.75 * vmem_cap),
                         max(32 << 20, fp(TB) + (8 << 20))))
    compiler_params = pltpu.CompilerParams(
        dimension_semantics=("parallel",),
        vmem_limit_bytes=vmem_limit)

    out_block = pl.BlockSpec((TB, L1p, L2p), lambda b: (b, 0, 0))
    out_one = jax.ShapeDtypeStruct((Bp, L1p, L2p), jnp.float32)
    if return_scores:
        out_shape = (out_one, out_one)
        out_specs = (out_block, out_block)
    else:
        out_shape = out_one
        out_specs = out_block

    x_spec = pl.BlockSpec((TB, L1p, H), lambda b: (b, 0, 0))
    y_spec = pl.BlockSpec((TB, L2p, H), lambda b: (b, 0, 0))
    m_spec = pl.BlockSpec((TB, 1, L2p), lambda b: (b, 0, 0))

    flops = 2 * Bp * L1p * L2p * H
    transcendentals = Bp * L1p * L2p + Bp * L1p          # exp + reciprocal
    bytes_accessed = 4 * (Bp * L1p * H + Bp * L2p * H + Bp * L2p
                          + n_out * Bp * L1p * L2p)

    if identity:
        kernel = _make_identity_kernel(return_scores)
        in_specs = [x_spec, y_spec, m_spec]
        args = (x_p, y_p, m_p)
    else:
        flops += 2 * Bp * (L1p + L2p) * H * P
        bytes_accessed += 4 * (H * P + P)
        kernel = _make_proj_kernel(return_scores)
        w_spec = pl.BlockSpec((H, P), lambda b: (0, 0))    # broadcast weights
        b_spec = pl.BlockSpec((1, P), lambda b: (0, 0))
        in_specs = [x_spec, y_spec, m_spec, w_spec, b_spec]
        args = (x_p, y_p, m_p, proj_w, proj_b.reshape(1, P))

    cost = pl.CostEstimate(flops=flops, transcendentals=transcendentals,
                           bytes_accessed=bytes_accessed)

    out = pl.pallas_call(
        kernel,
        out_shape=out_shape,
        grid=(grid_len,),
        in_specs=in_specs,
        out_specs=out_specs,
        compiler_params=compiler_params,
        cost_estimate=cost,
    )(*args)

    if return_scores:
        scores, alpha = out
        return scores[:B, :L1, :L2], alpha[:B, :L1, :L2]
    return out[:B, :L1, :L2]


# ---------------------------------------------------------------------------
# Reference + test harness
# ---------------------------------------------------------------------------

def _reference(x, y, y_mask, proj_w=None, proj_b=None, identity=True):
    if not identity:
        x = jnp.maximum(x @ proj_w + proj_b, 0.0)
        y = jnp.maximum(y @ proj_w + proj_b, 0.0)
    scores = jnp.einsum("bld,bmd->blm", x, y)
    mask = y_mask[:, None, :]
    p = jax.nn.softmax(scores * mask, axis=-1)
    p = p * mask
    alpha = p / (jnp.sum(p, axis=-1, keepdims=True) + 1e-13)
    return scores, alpha


def _run_case(key, B, L1, L2, H):
    kx, ky, kw, kb = jax.random.split(key, 4)
    x = jax.random.normal(kx, (B, L1, H), dtype=jnp.float32)
    y = jax.random.normal(ky, (B, L2, H), dtype=jnp.float32)
    y_mask = jnp.ones((B, L2), dtype=jnp.float32)
    # mask the tail of y in batch 0, keep all in the others
    y_mask = y_mask.at[0, max(L2 - 3, 0):].set(0.0)

    # ---- identity=True (module default: self.linear is None) --------------
    scores, alpha = seq_attn_mat(x, y, y_mask, identity=True)
    jax.block_until_ready((scores, alpha))
    ref_s, ref_a = _reference(x, y, y_mask, identity=True)
    assert jnp.allclose(scores, ref_s, atol=1e-5, rtol=1e-5)
    assert jnp.allclose(alpha, ref_a, atol=1e-5, rtol=1e-5)

    # ---- alpha-only output path --------------------------------------------
    alpha_only = seq_attn_mat(x, y, y_mask, identity=True, return_scores=False)
    jax.block_until_ready(alpha_only)
    assert jnp.allclose(alpha_only, ref_a, atol=1e-5, rtol=1e-5)

    # ---- identity=False (projector: Linear(H->H) + ReLU) -------------------
    proj_w = 0.05 * jax.random.normal(kw, (H, H), dtype=jnp.float32)
    proj_b = 0.01 * jax.random.normal(kb, (1, H), dtype=jnp.float32)
    scores_p, alpha_p = seq_attn_mat(x, y, y_mask, proj_w, proj_b,
                                     identity=False)
    jax.block_until_ready((scores_p, alpha_p))
    ref_sp, ref_ap = _reference(x, y, y_mask, proj_w, proj_b, identity=False)
    assert jnp.allclose(scores_p, ref_sp, atol=1e-5, rtol=1e-5)
    assert jnp.allclose(alpha_p, ref_ap, atol=1e-5, rtol=1e-5)


if __name__ == "__main__":
    key = jax.random.PRNGKey(0)
    k0, k1, k2 = jax.random.split(key, 3)

    # Canonical small shapes.
    _run_case(k0, B=2, L1=8, L2=8, H=32)
    # Larger batch exercises multi-batch blocking (TB > 1) and even-grid logic.
    _run_case(k1, B=8, L1=8, L2=8, H=32)
    # Ragged shapes exercise the wrapper padding path (L1->8, L2->128, B->cdiv).
    _run_case(k2, B=3, L1=7, L2=10, H=32)

    print("KERNEL_OK")
</pallas_src>

<mosaic_0001>
module attributes {stable_mosaic.version = 11 : i64} {
  func.func @kernel(%arg0: i32, %arg1: memref<1x8x32xf32, #tpu.memory_space<vmem>>, %arg2: memref<1x128x32xf32, #tpu.memory_space<vmem>>, %arg3: memref<1x1x128xf32, #tpu.memory_space<vmem>>, %arg4: memref<1x8x128xf32, #tpu.memory_space<vmem>>, %arg5: memref<1x8x128xf32, #tpu.memory_space<vmem>>) attributes {dimension_semantics = [#tpu.dimension_semantics<parallel>], iteration_bounds = array<i64: 2>, scalar_prefetch = 0 : i64, scratch_operands = 0 : i64, tpu.core_type = #tpu.core_type<tc>, window_params = [{transform_indices = @transform_0, window_bounds = array<i64: 1, 8, 32>}, {transform_indices = @transform_1, window_bounds = array<i64: 1, 128, 32>}, {transform_indices = @transform_2, window_bounds = array<i64: 1, 1, 128>}, {transform_indices = @transform_3, window_bounds = array<i64: 1, 8, 128>}, {transform_indices = @transform_4, window_bounds = array<i64: 1, 8, 128>}]} {
    %c0 = arith.constant 0 : index
    %c0_0 = arith.constant 0 : index
    %c0_1 = arith.constant 0 : index
    %0 = vector.load %arg1[%c0, %c0_0, %c0_1] : memref<1x8x32xf32, #tpu.memory_space<vmem>>, vector<1x8x32xf32>
    %c0_2 = arith.constant 0 : index
    %c0_3 = arith.constant 0 : index
    %c0_4 = arith.constant 0 : index
    %1 = vector.load %arg2[%c0_2, %c0_3, %c0_4] : memref<1x128x32xf32, #tpu.memory_space<vmem>>, vector<1x128x32xf32>
    %c0_5 = arith.constant 0 : index
    %c0_6 = arith.constant 0 : index
    %c0_7 = arith.constant 0 : index
    %2 = vector.load %arg3[%c0_5, %c0_6, %c0_7] : memref<1x1x128xf32, #tpu.memory_space<vmem>>, vector<1x1x128xf32>
    %cst = arith.constant dense<0.000000e+00> : vector<1x8x128xf32>
    %3 = tpu.matmul %0, %1, %cst {dimension_numbers = #tpu.dot_dimension_numbers<[2], [2], [1], [1], [0, 0, 0, 1, 1, 1], [0], [0]>} : vector<1x8x32xf32>, vector<1x128x32xf32>, vector<1x8x128xf32> -> vector<1x8x128xf32>
    %4 = vector.broadcast %2 : vector<1x1x128xf32> to vector<1x8x128xf32>
    %5 = arith.mulf %3, %4 : vector<1x8x128xf32>
    %cst_8 = arith.constant dense<0xFF800000> : vector<1x8xf32>
    %6 = vector.multi_reduction <maximumf>, %5, %cst_8 [2] : vector<1x8x128xf32> to vector<1x8xf32>
    %7 = vector.shape_cast %6 : vector<1x8xf32> to vector<1x8x1xf32>
    %8 = vector.broadcast %7 : vector<1x8x1xf32> to vector<1x8x128xf32>
    %9 = arith.subf %5, %8 : vector<1x8x128xf32>
    %10 = math.exp %9 : vector<1x8x128xf32>
    %11 = vector.broadcast %2 : vector<1x1x128xf32> to vector<1x8x128xf32>
    %12 = arith.mulf %10, %11 : vector<1x8x128xf32>
    %cst_9 = arith.constant 9.99999982E-14 : f32
    %13 = vector.broadcast %cst_9 : f32 to vector<1x1x128xf32>
    %14 = arith.addf %2, %13 : vector<1x1x128xf32>
    %15 = vector.broadcast %14 : vector<1x1x128xf32> to vector<1x8x128xf32>
    %16 = arith.mulf %10, %15 : vector<1x8x128xf32>
    %cst_10 = arith.constant dense<0.000000e+00> : vector<1x8xf32>
    %17 = vector.multi_reduction <add>, %16, %cst_10 [2] : vector<1x8x128xf32> to vector<1x8xf32>
    %18 = vector.shape_cast %17 : vector<1x8xf32> to vector<1x8x1xf32>
    %19 = tpu.reciprocal %18 {approx = true} : vector<1x8x1xf32> -> vector<1x8x1xf32>
    %20 = arith.mulf %18, %19 : vector<1x8x1xf32>
    %cst_11 = arith.constant 2.000000e+00 : f32
    %21 = vector.broadcast %cst_11 : f32 to vector<1x8x1xf32>
    %22 = arith.subf %21, %20 : vector<1x8x1xf32>
    %23 = arith.mulf %19, %22 : vector<1x8x1xf32>
    %24 = vector.broadcast %23 : vector<1x8x1xf32> to vector<1x8x128xf32>
    %25 = arith.mulf %12, %24 : vector<1x8x128xf32>
    %c0_12 = arith.constant 0 : index
    %c0_13 = arith.constant 0 : index
    %c0_14 = arith.constant 0 : index
    %26 = vector.load %arg4[%c0_12, %c0_13, %c0_14] : memref<1x8x128xf32, #tpu.memory_space<vmem>>, vector<1x8x128xf32>
    tpu.vector_store %arg4[%c0_12, %c0_13, %c0_14], %3 {strides = array<i32>} : memref<1x8x128xf32, #tpu.memory_space<vmem>>, vector<1x8x128xf32>,
    %c0_15 = arith.constant 0 : index
    %c0_16 = arith.constant 0 : index
    %c0_17 = arith.constant 0 : index
    %27 = vector.load %arg5[%c0_15, %c0_16, %c0_17] : memref<1x8x128xf32, #tpu.memory_space<vmem>>, vector<1x8x128xf32>
    tpu.vector_store %arg5[%c0_15, %c0_16, %c0_17], %25 {strides = array<i32>} : memref<1x8x128xf32, #tpu.memory_space<vmem>>, vector<1x8x128xf32>,
    return
  }
  func.func @transform_0(%arg0: i32) -> (i32, i32, i32) {
    %c0_i32 = arith.constant 0 : i32
    %c0_i32_0 = arith.constant 0 : i32
    %c0_i32_1 = arith.constant 0 : i32
    return %arg0, %c0_i32, %c0_i32_0 : i32, i32, i32
  }
  func.func @transform_1(%arg0: i32) -> (i32, i32, i32) {
    %c0_i32 = arith.constant 0 : i32
    %c0_i32_0 = arith.constant 0 : i32
    %c0_i32_1 = arith.constant 0 : i32
    return %arg0, %c0_i32, %c0_i32_0 : i32, i32, i32
  }
  func.func @transform_2(%arg0: i32) -> (i32, i32, i32) {
    %c0_i32 = arith.constant 0 : i32
    %c0_i32_0 = arith.constant 0 : i32
    %c0_i32_1 = arith.constant 0 : i32
    return %arg0, %c0_i32, %c0_i32_0 : i32, i32, i32
  }
  func.func @transform_3(%arg0: i32) -> (i32, i32, i32) {
    %c0_i32 = arith.constant 0 : i32
    %c0_i32_0 = arith.constant 0 : i32
    %c0_i32_1 = arith.constant 0 : i32
    return %arg0, %c0_i32, %c0_i32_0 : i32, i32, i32
  }
  func.func @transform_4(%arg0: i32) -> (i32, i32, i32) {
    %c0_i32 = arith.constant 0 : i32
    %c0_i32_0 = arith.constant 0 : i32
    %c0_i32_1 = arith.constant 0 : i32
    return %arg0, %c0_i32, %c0_i32_0 : i32, i32, i32
  }
}

</mosaic_0001>

<bundles_post_ra>
// kernel: seq_attn_mat.1
= control target key start
LH: loop header
LB: loop body
LE: loop exit
PB: predicated region body
PF: predicated region fallthrough
CT: control target
= control target key end

     0   :  { %10 = vsyncpa [#allocation3], 0  ;;  %s1033_s0 = inlined_call_operand.vmem [shape: f32[2,8,32], index: 0, kind: input, shape index: {}]   ;;  %s1034_s1 = inlined_call_operand.vmem [shape: f32[2,128,32], index: 1, kind: input, shape index: {}]   ;;  %s1035_s2 = inlined_call_operand.vmem [shape: f32[2,1,128], index: 2, kind: input, shape index: {}]   ;;  %s1036_s3 = inlined_call_operand.hbm [shape: f32[2,8,128], index: 3, kind: output, shape index: {0}]   ;;  %s1037_s4 = inlined_call_operand.hbm [shape: f32[2,8,128], index: 4, kind: output, shape index: {1}]  }
   0x1   :  { %12 = vsyncpa [#allocation3 + $0x1], 0 }
   0x2   :  { %13 = vsyncpa [#allocation5], 0 }
   0x3   :  { %15 = vsyncpa [#allocation5 + $0x1], 0  ;;  %s846_s15 = smov 0   ;;  %s848_s16 = smov 0  }
   0x4   :  { %s850_s17 = smov 0   ;;  %s852_s18 = smov 0  }
   0x5 LB: > { %s867_s19 = sadd.s32 4294967295, %s814_s18   ;;  %s552_s20 = sadd.s32 4294967294, %s814_s18   ;;  %s814_s18 = sphi %s852_s18, %s1045_s18   ;;  %s810_s17 = sphi %s850_s17, %s1044_s17   ;;  %s806_s16 = sphi %s848_s16, %s1043_s16   ;;  %s802_s15 = sphi %s846_s15, %s1042_s15  }
   0x6   : > { %s871_s21 = sadd.s32 1, %s814_s18   ;;  %s106_s22 = sadd.s32 1, %s810_s17 }
   0x7   : > { %s103_s23 = ssub.s32 %s814_s18, %s871_s21  ;;  %p116_p0 = scmp.ne.s32.totalorder %s810_s17, %s806_s16 }
   0x8   : > { %p104_p1 = scmp.eq.s32.totalorder %s103_s23, 0  ;;  %p117_p2 = scmp.eq.s32.totalorder %s867_s19, 1 }
   0x9   : > { %p122_p3 = scmp.ne.s32.totalorder %s806_s16, %s802_s15  ;;  %p123_p4 = scmp.eq.s32.totalorder %s552_s20, 1 }
   0xa   : > { %s882_s24 = scalar_select %p104_p1, %s810_s17, %s106_s22  }
   0xb   : > { %p884_p5 = por %p117_p2, %p116_p0  ;;  %p888_p6 = por %p123_p4, %p122_p3 }
   0xc   : > { %p555_p7 = scmp.ge.s32.totalorder %s814_s18, 1  ;;  %p188_p8 = scmp.lt.s32.totalorder %s814_s18, 3 }
   0xe   : > { %p189_p9 = pnand %p555_p7, %p188_p8 }
   0xf   : > { %p226_p10 = scmp.lt.s32.totalorder (!%p189_p9), %s867_s19, 1  ;;  %v816_v0 = vmov (!%p189_p9), 0.0|0.0   ;;  %vm817_vm0 = vmmov (!%p189_p9), 0   ;;  %v818_v1 = vmov (!%p189_p9), 0.0   ;;  %vm256_vm1 = vcmask (!%p189_p9), 261120   ;;  %s952_s13 = sand.u32 (!%p189_p9), 1, %s806_s16  }
  0x10   : > { %192 = sbr.rel (%p189_p9) target bundleno = 641 (0x281), region = 32  ;;  %637 = vmatprep.subr.bf16.mxu0 (!%p189_p9), %v816_v0  ;;  %634 = vmatprep.mubr.msk.f32.mxu0 (!%p189_p9), %vm817_vm0, %v818_v1  ;;  %vm908_vm2 = vmpackc.low (!%p189_p9), %vm256_vm1, %vm256_vm1  ;;  %v379_v28 = vlaneseq (!%p189_p9)  ;;  %s556_s14 = sshll.u32 (!%p189_p9), %s952_s13, 3 }
  0x11   : > { %s218_s20 = scalar_lea.vmem (!%p189_p9), [#allocation2], %s556_s14  ;;  %s580_s22 = sshll.u32 (!%p189_p9), %s867_s19, 7 }
  0x12   : > { %v380_v29 = vshrl.u32 (!%p189_p9), %v379_v28, 7  ;;  %s427_s29 = sshll.u32 (!%p189_p9), %s218_s20, 4  ;;  %s409_s30 = scalar_lea.sflag (!%p189_p9), [#allocation3], %s952_s13  ;;  %s428_s29 = int_to_ptr.vmem [resolvable:$true] %s427_s29 }
  0x14   : > { %v381_v30 = vsub.s32 (!%p189_p9), 0, %v380_v29 }
  0x17   : > { %s896_s27 = scalar_select %p226_p10, %s867_s19, 1 }
  0x19   : > { %s584_s28 = sshll.u32 %s896_s27, 7  ;;  %s558_s6 = sshll.u32 %s896_s27, 3 }
  0x1a   : > { %s902_s5 = scalar_lea.vmem %s1034_s1, %s584_s28  ;;  %s229_s9 = scalar_lea.vmem %s1033_s0, %s558_s6 }
  0x1b   : > { %v239_v2 = vld [vmem:[%s902_s5] sm:$0xff]  ;;  %v240_v3 = vld [vmem:[%s902_s5 + $0x8] sm:$0xff]  ;;  %v241_v6 = vld [vmem:[%s902_s5 + $0x10] sm:$0xff]  ;;  %s237_s12 = scalar_lea.vmem %s1035_s2, %s896_s27  ;;  %s963_s28 = scalar_lea.hbm %s1036_s3, %s580_s22 }
  0x1c   : > { %v638_v5 = vpack.c.bf16 %v240_v3, %v239_v2  ;;  %v242_v7 = vld [vmem:[%s902_s5 + $0x18] sm:$0xff]  ;;  %v243_v9 = vld [vmem:[%s902_s5 + $0x20] sm:$0xff]  ;;  %v244_v10 = vld [vmem:[%s902_s5 + $0x28] sm:$0xff]  ;;  %s819_s6 = smov [#allocation2]  }
  0x1d   : > { %v642_v8 = vpack.c.bf16 %v242_v7, %v241_v6  ;;  %v646_v11 = vpack.c.bf16 %v244_v10, %v243_v9  ;;  %v245_v12 = vld [vmem:[%s902_s5 + $0x30] sm:$0xff]  ;;  %v246_v13 = vld [vmem:[%s902_s5 + $0x38] sm:$0xff]  ;;  %v247_v15 = vld [vmem:[%s902_s5 + $0x40] sm:$0xff]  ;;  %s724_s7 = sshll.u32 %s819_s6, 4  ;;  %s725_s7 = int_to_ptr.vmem [resolvable:$false] %s724_s7 }
  0x1e   : > { %640 = vmatpush3.bf16.xpose.msk.msra.mxu0 %vm908_vm2, %v638_v5  ;;  %v650_v14 = vpack.c.bf16 %v246_v13, %v245_v12  ;;  %v248_v16 = vld [vmem:[%s902_s5 + $0x48] sm:$0xff]  ;;  %v249_v18 = vld [vmem:[%s902_s5 + $0x50] sm:$0xff]  ;;  %v250_v19 = vld [vmem:[%s902_s5 + $0x58] sm:$0xff]  ;;  %s726_s8 = scalar_lea.vmem %s725_s7, 256  ;;  %p727_p0 = scmp.lt.s32.totalorder %s428_s29, %s725_s7 }
  0x1f   : > { %641 = vmatprep.subr.bf16.mxu0 %v816_v0  ;;  %v654_v17 = vpack.c.bf16 %v248_v16, %v247_v15  ;;  %v658_v20 = vpack.c.bf16 %v250_v19, %v249_v18  ;;  %v251_v21 = vld [vmem:[%s902_s5 + $0x60] sm:$0xff]  ;;  %v252_v22 = vld [vmem:[%s902_s5 + $0x68] sm:$0xff]  ;;  %v253_v24 = vld [vmem:[%s902_s5 + $0x70] sm:$0xff] }
  0x20   : > { %v662_v23 = vpack.c.bf16 %v252_v22, %v251_v21  ;;  %v254_v25 = vld [vmem:[%s902_s5 + $0x78] sm:$0xff]  ;;  %v238_v27 = vld [vmem:[%s229_s9] sm:$0xff]  ;;  %s720_s5 = scalar_lea.vmem %s428_s29, 128 }
  0x21   : > { %v666_v26 = vpack.c.bf16 %v254_v25, %v253_v24  ;;  %v255_v31 = vld [vmem:[%s237_s12] sm:$0x1]  ;;  %p721_p11 = scmp.ne.s32.totalorder %s428_s29, %s720_s5  ;;  %p728_p1 = scmp.lt.s32.totalorder %s726_s8, %s720_s5 }
  0x22   : > { %v382_v32 = vrot.slane %v255_v31, %v381_v30  ;;  %v391_v39 = vadd.f32 1e-13, %v255_v31 }
  0x23   : > { %p722_p12 = pnand %p721_p11, %p884_p5  ;;  %p729_p2 = por %p728_p1, %p727_p0 }
  0x24   : > { %v396_v40 = vrot.slane %v391_v39, %v381_v30 }
  0x25   : > { %p723_p13 = pneg %p722_p12 }
  0x26   : > { %644 = vmatpush3.bf16.xpose.msk.msra.mxu0 %vm908_vm2, %v642_v8 }
  0x27   : > { %645 = vmatprep.subr.bf16.mxu0 %v816_v0  ;;  %p730_p3 = pnand %p729_p2, %p723_p13 }
  0x2e   : > { %648 = vmatpush3.bf16.xpose.msk.msra.mxu0 %vm908_vm2, %v646_v11 }
  0x2f   : > { %649 = vmatprep.subr.bf16.mxu0 %v816_v0 }
  0x36   : > { %652 = vmatpush3.bf16.xpose.msk.msra.mxu0 %vm908_vm2, %v650_v14 }
  0x37   : > { %653 = vmatprep.subr.bf16.mxu0 %v816_v0 }
  0x3e   : > { %656 = vmatpush3.bf16.xpose.msk.msra.mxu0 %vm908_vm2, %v654_v17 }
  0x3f   : > { %657 = vmatprep.subr.bf16.mxu0 %v816_v0 }
  0x46   : > { %660 = vmatpush3.bf16.xpose.msk.msra.mxu0 %vm908_vm2, %v658_v20 }
  0x47   : > { %661 = vmatprep.subr.bf16.mxu0 %v816_v0 }
  0x4e   : > { %664 = vmatpush3.bf16.xpose.msk.msra.mxu0 %vm908_vm2, %v662_v23 }
  0x4f   : > { %665 = vmatprep.subr.bf16.mxu0 %v816_v0 }
  0x56   : > { %668 = vmatpush3.bf16.xpose.msk.msra.mxu0 %vm908_vm2, %v666_v26 }
  0x5d   : > { %635 = vmatmul.mubr.msk.f32.vlgmr.msra.gmra.mrb[0].mxu0 %vm256_vm1, %v238_v27 }
 0x130   : > { %v374_v33 = vpop.f32.mrb[0].mxu0 }
 0x131   : > { %406 = vst [vmem:[%s218_s20] sm:$0xff] %v374_v33  ;;  %v636_v34 = vpop.f32.mrb[1].mxu0  ;;  %v384_v35 = vmul.f32 %v382_v32, %v374_v33 }
 0x133   : > { %385 = vmax.xlane.f32.xlu0 %v384_v35 }
 0x1c0   : > { %v386_v36 = vpop.xlane.xlu0 %385 }
 0x1c1   : > { %v387_v37 = vsub.f32 %v384_v35, %v386_v36 }
 0x1c3   : > { %v388_v38 = vmul.f32 1.442695, %v387_v37 }
 0x1c5   : > { %716 = vpow2.f32 %v388_v38 }
 0x1cf   : > { %v717_v41 = vpop.eup %716 }
 0x1d0   : > { %v398_v42 = vmul.f32 %v717_v41, %v396_v40 }
 0x1d2   : > { %399 = vadd.xlane.f32.xlu0 %v398_v42 }
 0x1d3   : > { %733 = shalt.err (!%p730_p3)
}
 0x1d4   : > { %s734_s9 = scalar_lea.hbm %s963_s28, 128  ;;  %s738_s12 = scalar_lea.hbm %s1036_s3, 256 }
 0x1d5   : > { %p735_p4 = scmp.ne.s32.totalorder %s963_s28, %s734_s9  ;;  %p739_p9 = scmp.lt.u32.totalorder %s963_s28, %s1036_s3 }
 0x1d6   : > { %p740_p10 = scmp.lt.u32.totalorder %s738_s12, %s734_s9  ;;  %p742_p12 = scmp.lt.u32.totalorder %s734_s9, %s963_s28 }
 0x1d7   : > { %p736_p7 = pnand %p735_p4, %p884_p5 }
 0x1d8   : > { %p741_p11 = por %p740_p10, %p739_p9 }
 0x1d9   : > { %p737_p8 = pneg %p736_p7 }
 0x1da   : > { %p743_p13 = por %p742_p12, %p741_p11 }
 0x1dc   : > { %p744_p0 = pnand %p743_p13, %p737_p8 }
 0x1de   : > { %747 = shalt.err (!%p744_p0)
}
 0x1df   : > { %669 = dma.vmem_to_hbm [thread:$0]  (%p884_p5), %s428_s29, 128, %s963_s28, %s409_s30   ;;  %v390_v47 = vmul.f32 %v717_v41, %v382_v32 }
 0x1e0   : > { %s225_s27 = scalar_lea.vmem [#allocation4], %s556_s14  ;;  %s990_s8 = scalar_lea.hbm %s1037_s4, %s580_s22 }
 0x1e1   : > { %s440_s5 = sshll.u32 %s225_s27, 4  ;;  %s414_s28 = scalar_lea.sflag [#allocation5], %s952_s13  ;;  %s992_s5 = int_to_ptr.vmem [resolvable:$true] %s440_s5 }
 0x1e2   : > { %s748_s29 = scalar_lea.vmem %s992_s5, 128  ;;  %s820_s14 = smov [#allocation4]  }
 0x1e3   : > { %p749_p1 = scmp.ne.s32.totalorder %s992_s5, %s748_s29  ;;  %s752_s30 = sshll.u32 %s820_s14, 4  ;;  %s753_s30 = int_to_ptr.vmem [resolvable:$false] %s752_s30 }
 0x1e4   : > { %s754_s19 = scalar_lea.vmem %s753_s30, 256  ;;  %p755_p4 = scmp.lt.s32.totalorder %s992_s5, %s753_s30 }
 0x1e5   : > { %p750_p2 = pnand %p749_p1, %p884_p5  ;;  %p756_p7 = scmp.lt.s32.totalorder %s754_s19, %s748_s29 }
 0x1e7   : > { %p751_p3 = pneg %p750_p2  ;;  %p757_p8 = por %p756_p7, %p755_p4 }
 0x1e9   : > { %p758_p9 = pnand %p757_p8, %p751_p3 }
 0x25f   : > { %v400_v43 = vpop.xlane.xlu0 %399 }
 0x260   : > { %718 = vrcp.f32 %v400_v43 }
 0x26a   : > { %v719_v44 = vpop.eup %718 }
 0x26b   : > { %v402_v45 = vmul.f32 %v719_v44, %v400_v43 }
 0x26d   : > { %v403_v46 = vsub.f32 2.0, %v402_v45 }
 0x26f   : > { %v404_v48 = vmul.f32 %v719_v44, %v403_v46 }
 0x271   : > { %v405_v49 = vmul.f32 %v404_v48, %v390_v47 }
 0x273   : > { %407 = vst [vmem:[%s225_s27] sm:$0xff] %v405_v49 }
 0x274   : > { %761 = shalt.err (!%p758_p9)
}
 0x275   : > { %s762_s13 = scalar_lea.hbm %s990_s8, 128  ;;  %s766_s10 = scalar_lea.hbm %s1037_s4, 256 }
 0x276   : > { %p763_p10 = scmp.ne.s32.totalorder %s990_s8, %s762_s13  ;;  %p767_p13 = scmp.lt.u32.totalorder %s990_s8, %s1037_s4 }
 0x277   : > { %p768_p0 = scmp.lt.u32.totalorder %s766_s10, %s762_s13  ;;  %p770_p2 = scmp.lt.u32.totalorder %s762_s13, %s990_s8 }
 0x278   : > { %p764_p11 = pnand %p763_p10, %p884_p5 }
 0x279   : > { %p769_p1 = por %p768_p0, %p767_p13 }
 0x27a   : > { %p765_p12 = pneg %p764_p11 }
 0x27b   : > { %p771_p3 = por %p770_p2, %p769_p1 }
 0x27d   : > { %p772_p4 = pnand %p771_p3, %p765_p12 }
 0x27f   : > { %775 = shalt.err (!%p772_p4)
}
 0x280   : > { %670 = dma.vmem_to_hbm [thread:$0]  (%p884_p5), %s992_s5, 128, %s990_s8, %s414_s28  }
 0x281 PF: > { %p680_p7 = scmp.ge.s32.totalorder %s814_s18, 2  ;;  %s452_s20 = sand.u32 1, %s802_s15  }
 0x282   : > { %s453_s23 = scalar_lea.sflag [#allocation3], %s452_s20 }
 0x283   : > { %p674_p8 = pnand %p680_p7, %p888_p6 }
 0x285   : > { %793 = dma.done.wait (!%p674_p8), %s453_s23, 128  }
 0x286   : > { %795 = vsyncadd (!%p674_p8), %s453_s23, 4294967168  ;;  %s462_s27 = scalar_lea.sflag [#allocation5], %s452_s20 }
 0x287   : > { %797 = dma.done.wait (!%p674_p8), %s462_s27, 128  }
 0x288   : > { %799 = vsyncadd (!%p674_p8), %s462_s27, 4294967168  ;;  %p18_p5 = scmp.ge.s32.totalorder %s871_s21, 4   ;;  %s1042_s15 = smov %s806_s16 }
 0x289   : > { %s1043_s16 = smov %s810_s17  ;;  %s1044_s17 = smov %s882_s24 }
 0x28a   : > { %s1045_s18 = smov %s871_s21  ;;  %20 = sbr.rel (!%p18_p5) target bundleno = 5 (0x5), region = 90 }
 0x291   :  { %467 = vsyncpa [#allocation3], 1 }
 0x292   :  { %469 = vsyncpa [#allocation3 + $0x1], 1 }
 0x293   :  { %470 = vsyncpa [#allocation5], 1 }
 0x294   :  { %472 = vsyncpa [#allocation5 + $0x1], 1 }

</bundles_post_ra>
